<compile_context>
chip_gen: v7x
topology: tpu7x:2x2x1
jax: 0.10.0
libtpu: 0.0.40
codegen_flags: <defaults>
</compile_context>

<pallas_src>
import jax
import jax.numpy as jnp
from jax.experimental import pallas as pl
from jax.experimental.pallas import tpu as pltpu


def attention_kernel(x_ref, w1_ref, b1_ref, w2_ref, o_ref):
    # x_ref : (TB, S, H)  hidden_states block (input dtype)
    # w1_ref: (H, H)      first Linear weight, (in, out) layout, bf16, resident
    # b1_ref: (1, H)      first Linear bias (f32)
    # w2_ref: (1, H)      second Linear weight (nn.Linear(H,1).weight), f32
    # o_ref : (TB, H)     lane-dense pooled output block
    TB, S, H = x_ref.shape

    x3 = x_ref[...]                                     # (TB, S, H)
    x2d = x3.reshape(TB * S, H)                         # big-M MXU operand

    # ---- Linear(H, H) + Tanh: one big-M bf16 matmul, f32 accumulation ------
    # bf16 operands run the MXU at full rate on v5e/v6e/v7x; elementwise math
    # stays f32 (v5e has no bf16 VPU/EUP).
    h = jnp.tanh(
        jnp.dot(x2d.astype(jnp.bfloat16), w1_ref[...],
                preferred_element_type=jnp.float32)
        + b1_ref[...]
    )                                                   # (TB*S, H) f32
    # NOTE: for H below ~256 the single EUP slot (tanh ~ 1 transcendental per
    # element) binds before the MXU; the bf16 matmul is then hidden under it.

    # ---- Linear(H, 1): VPU multiply + lane (XLU) reduce — no N=1 matmul ----
    # (Linear(H,1) bias omitted: softmax is shift-invariant.)
    h3 = h.reshape(TB, S, H)
    scores = jnp.sum(h3 * w2_ref[...], axis=-1)         # (TB, S) f32

    # ---- softmax over the sequence axis (dim=1 of hidden_states) -----------
    scores = scores - jnp.max(scores, axis=-1, keepdims=True)
    e = jnp.exp(scores)
    p = e * pl.reciprocal(jnp.sum(e, axis=-1, keepdims=True), approx=True)

    # ---- weighted sum over seq: VPU multiply + sublane reduce ---------------
    # Keeps the vector-extended slot free for the big matmul; no f32 copy of x.
    o = jnp.sum(p[:, :, None].astype(x3.dtype) * x3, axis=1)    # (TB, H)

    o_ref[...] = o.astype(o_ref.dtype)


def _round_up(n, m):
    return -(-n // m) * m


def _vmem_budget_bytes():
    # Generation-aware VMEM budget: 3/4 of capacity, capped at 96 MiB
    # (v5e/v6e: 128 MiB -> 96 MiB; v7x: 64 MiB per TC -> 48 MiB).
    try:
        cap = int(pltpu.get_tpu_info().vmem_capacity_bytes)
    except Exception:
        cap = 64 * 1024 * 1024            # assume the smallest (v7x per-TC) VMEM
    return min(96 * 1024 * 1024, (cap * 3) // 4)


def _choose_tb(B, S, H, x_dtype, vmem_budget):
    x_bytes = jnp.dtype(x_dtype).itemsize
    sub = {1: 32, 2: 16}.get(x_bytes, 8)  # sublane-native row multiple per dtype
    # Per-batch-row VMEM: double-buffered x block + f32 tanh activations +
    # bf16 matmul operand copy + double-buffered (tb, H) output rows.
    per_row = S * H * (2 * x_bytes + 4 + 2) + 2 * H * x_bytes
    fixed = 2 * H * H * 2 + 4 * H * 4     # bf16 W1 (<=2 bufs) + small operands
    tb = max(sub, ((vmem_budget - fixed) // max(per_row, 1)) // sub * sub)
    # v7x megacore: keep >= 2 grid steps (2 TCs/chip) when the batch allows.
    tb = min(tb, max(sub, _round_up(pl.cdiv(B, 2), sub)))
    return int(tb)


def attention_layer(x, w1, b1, w2, *, tb=None):
    """x: (B, S, H); w1: (H, H) pre-transposed (in, out); b1: (1, H);
    w2: (1, H) (== nn.Linear(H, 1).weight).  Returns (B, H).
    The Linear(H, 1) bias is omitted (softmax shift-invariance)."""
    B, S, H = x.shape
    budget = _vmem_budget_bytes()
    if tb is None:
        tb = _choose_tb(B, S, H, x.dtype, budget)
    b_pad = _round_up(B, tb)
    n_steps = b_pad // tb
    if b_pad != B:
        x = jnp.pad(x, ((0, b_pad - B), (0, 0), (0, 0)))

    w1 = w1.astype(jnp.bfloat16)          # half the resident-weight footprint
    b1 = b1.astype(jnp.float32)
    w2 = w2.astype(jnp.float32)

    x_bytes = jnp.dtype(x.dtype).itemsize
    cost = pl.CostEstimate(
        flops=2 * b_pad * S * H * H + 4 * b_pad * S * H,
        transcendentals=b_pad * S * H + b_pad * S,
        bytes_accessed=b_pad * S * H * x_bytes + H * H * 2 + b_pad * H * x_bytes,
    )

    def build(single_buffer_consts):
        def const_spec(shape):
            kwargs = {}
            if single_buffer_consts:
                kwargs["pipeline_mode"] = pl.Buffered(1)
            return pl.BlockSpec(shape, lambda i: (0,) * len(shape), **kwargs)

        return pl.pallas_call(
            attention_kernel,
            out_shape=jax.ShapeDtypeStruct((b_pad, H), x.dtype),
            grid_spec=pltpu.PrefetchScalarGridSpec(
                num_scalar_prefetch=0,
                grid=(n_steps,),
                in_specs=[
                    pl.BlockSpec((tb, S, H), lambda i: (i, 0, 0)),  # x block
                    const_spec((H, H)),                             # W1 (resident)
                    const_spec((1, H)),                             # b1
                    const_spec((1, H)),                             # W2 row
                ],
                out_specs=pl.BlockSpec((tb, H), lambda i: (i, 0)),  # lane-dense
            ),
            compiler_params=pltpu.CompilerParams(
                dimension_semantics=("parallel",),
                vmem_limit_bytes=int(budget),
            ),
            cost_estimate=cost,
        )

    # Grid-invariant operands ideally get a single VMEM buffer; fall back to
    # default double buffering if this Pallas build rejects Buffered(1).
    try:
        out = build(True)(x, w1, b1, w2)
    except Exception:
        out = build(False)(x, w1, b1, w2)

    # TODO(synk): when the (tb, S, H) block no longer fits VMEM (large S/H,
    # especially v7x's 64 MiB), add an "arbitrary" inner grid axis over S with
    # an online-softmax accumulator instead of shrinking tb toward 1.
    return out[:B]


def reference(x, w1, b1, w2, b2):
    # Pure-JAX reference matching the PyTorch module semantics (incl. b2).
    scores = jnp.tanh(x @ w1 + b1) @ w2.T + b2          # (B, S, 1)
    p = jax.nn.softmax(scores, axis=1)                  # softmax over seq
    return jnp.sum(p * x, axis=1)                       # (B, H)


if __name__ == "__main__":
    B, S, H = 2, 8, 32
    key = jax.random.PRNGKey(0)
    kx, kw1, kb1, kw2, kb2 = jax.random.split(key, 5)

    x = jax.random.normal(kx, (B, S, H), dtype=jnp.float32)
    # nn.Linear(H, H) weight stored pre-transposed to (in=H, out=H);
    # nn.Linear(H, 1) weight kept in its native (1, H) layout.
    w1 = jax.random.normal(kw1, (H, H), dtype=jnp.float32) * 0.1
    b1 = jax.random.normal(kb1, (1, H), dtype=jnp.float32) * 0.1
    w2 = jax.random.normal(kw2, (1, H), dtype=jnp.float32) * 0.1
    b2 = jax.random.normal(kb2, (1, 1), dtype=jnp.float32) * 0.1  # reference only

    out = attention_layer(x, w1, b1, w2)
    out = jax.block_until_ready(out)

    ref = reference(x, w1, b1, w2, b2)
    assert out.shape == (B, H)
    # Tolerance covers the bf16 first-matmul operands (f32 accumulation) and
    # the EUP approximate reciprocal in the softmax normalization.
    assert jnp.allclose(out, ref, atol=2e-2, rtol=2e-2), "mismatch vs reference"

    print("KERNEL_OK")
</pallas_src>

<mosaic_0001>
module attributes {stable_mosaic.version = 11 : i64} {
  func.func @attention_kernel(%arg0: i32, %arg1: memref<8x8x32xf32, #tpu.memory_space<vmem>>, %arg2: memref<32x32xbf16, #tpu.memory_space<vmem>>, %arg3: memref<1x32xf32, #tpu.memory_space<vmem>>, %arg4: memref<1x32xf32, #tpu.memory_space<vmem>>, %arg5: memref<8x32xf32, #tpu.memory_space<vmem>>) attributes {dimension_semantics = [#tpu.dimension_semantics<parallel>], iteration_bounds = array<i64: 1>, scalar_prefetch = 0 : i64, scratch_operands = 0 : i64, tpu.core_type = #tpu.core_type<tc>, window_params = [{transform_indices = @transform_0, window_bounds = array<i64: 8, 8, 32>}, {pipeline_mode = #tpu.pipeline_mode<synchronous>, transform_indices = @transform_1, window_bounds = array<i64: 32, 32>}, {pipeline_mode = #tpu.pipeline_mode<synchronous>, transform_indices = @transform_2, window_bounds = array<i64: 1, 32>}, {pipeline_mode = #tpu.pipeline_mode<synchronous>, transform_indices = @transform_3, window_bounds = array<i64: 1, 32>}, {transform_indices = @transform_4, window_bounds = array<i64: 8, 32>}]} {
    %c0 = arith.constant 0 : index
    %c0_0 = arith.constant 0 : index
    %c0_1 = arith.constant 0 : index
    %0 = vector.load %arg1[%c0, %c0_0, %c0_1] : memref<8x8x32xf32, #tpu.memory_space<vmem>>, vector<8x8x32xf32>
    %1 = vector.shape_cast %0 : vector<8x8x32xf32> to vector<64x32xf32>
    %2 = arith.truncf %1 : vector<64x32xf32> to vector<64x32xbf16>
    %c0_2 = arith.constant 0 : index
    %c0_3 = arith.constant 0 : index
    %3 = vector.load %arg2[%c0_2, %c0_3] : memref<32x32xbf16, #tpu.memory_space<vmem>>, vector<32x32xbf16>
    %cst = arith.constant dense<0.000000e+00> : vector<64x32xf32>
    %4 = tpu.matmul %2, %3, %cst {dimension_numbers = #tpu.dot_dimension_numbers<[1], [0], [0], [1], [0, 0, 1, 1], [], []>} : vector<64x32xbf16>, vector<32x32xbf16>, vector<64x32xf32> -> vector<64x32xf32>
    %c0_4 = arith.constant 0 : index
    %c0_5 = arith.constant 0 : index
    %5 = vector.load %arg3[%c0_4, %c0_5] : memref<1x32xf32, #tpu.memory_space<vmem>>, vector<1x32xf32>
    %6 = vector.broadcast %5 : vector<1x32xf32> to vector<64x32xf32>
    %7 = arith.addf %4, %6 : vector<64x32xf32>
    %8 = math.tanh %7 : vector<64x32xf32>
    %9 = vector.shape_cast %8 : vector<64x32xf32> to vector<8x8x32xf32>
    %c0_6 = arith.constant 0 : index
    %c0_7 = arith.constant 0 : index
    %10 = vector.load %arg4[%c0_6, %c0_7] : memref<1x32xf32, #tpu.memory_space<vmem>>, vector<1x32xf32>
    %11 = vector.shape_cast %10 : vector<1x32xf32> to vector<1x1x32xf32>
    %12 = vector.broadcast %11 : vector<1x1x32xf32> to vector<8x8x32xf32>
    %13 = arith.mulf %9, %12 : vector<8x8x32xf32>
    %cst_8 = arith.constant dense<0.000000e+00> : vector<8x8xf32>
    %14 = vector.multi_reduction <add>, %13, %cst_8 [2] : vector<8x8x32xf32> to vector<8x8xf32>
    %cst_9 = arith.constant dense<0xFF800000> : vector<8xf32>
    %15 = vector.multi_reduction <maximumf>, %14, %cst_9 [1] : vector<8x8xf32> to vector<8xf32>
    %16 = vector.shape_cast %15 : vector<8xf32> to vector<8x1xf32>
    %17 = vector.broadcast %16 : vector<8x1xf32> to vector<8x8xf32>
    %18 = arith.subf %14, %17 : vector<8x8xf32>
    %19 = math.exp %18 : vector<8x8xf32>
    %cst_10 = arith.constant dense<0.000000e+00> : vector<8xf32>
    %20 = vector.multi_reduction <add>, %19, %cst_10 [1] : vector<8x8xf32> to vector<8xf32>
    %21 = vector.shape_cast %20 : vector<8xf32> to vector<8x1xf32>
    %22 = tpu.reciprocal %21 {approx = true} : vector<8x1xf32> -> vector<8x1xf32>
    %23 = vector.broadcast %22 : vector<8x1xf32> to vector<8x8xf32>
    %24 = arith.mulf %19, %23 : vector<8x8xf32>
    %25 = vector.shape_cast %24 : vector<8x8xf32> to vector<8x8x1xf32>
    %26 = vector.broadcast %25 : vector<8x8x1xf32> to vector<8x8x32xf32>
    %27 = arith.mulf %26, %0 : vector<8x8x32xf32>
    %cst_11 = arith.constant dense<0.000000e+00> : vector<8x32xf32>
    %28 = vector.multi_reduction <add>, %27, %cst_11 [1] : vector<8x8x32xf32> to vector<8x32xf32>
    %c0_12 = arith.constant 0 : index
    %c0_13 = arith.constant 0 : index
    %29 = vector.load %arg5[%c0_12, %c0_13] : memref<8x32xf32, #tpu.memory_space<vmem>>, vector<8x32xf32>
    tpu.vector_store %arg5[%c0_12, %c0_13], %28 {strides = array<i32>} : memref<8x32xf32, #tpu.memory_space<vmem>>, vector<8x32xf32>,
    return
  }
  func.func @transform_0(%arg0: i32) -> (i32, i32, i32) {
    %c0_i32 = arith.constant 0 : i32
    %c0_i32_0 = arith.constant 0 : i32
    %c0_i32_1 = arith.constant 0 : i32
    return %arg0, %c0_i32, %c0_i32_0 : i32, i32, i32
  }
  func.func @transform_1(%arg0: i32) -> (i32, i32) {
    %c0_i32 = arith.constant 0 : i32
    %c0_i32_0 = arith.constant 0 : i32
    %c0_i32_1 = arith.constant 0 : i32
    return %c0_i32, %c0_i32_0 : i32, i32
  }
  func.func @transform_2(%arg0: i32) -> (i32, i32) {
    %c0_i32 = arith.constant 0 : i32
    %c0_i32_0 = arith.constant 0 : i32
    %c0_i32_1 = arith.constant 0 : i32
    return %c0_i32, %c0_i32_0 : i32, i32
  }
  func.func @transform_3(%arg0: i32) -> (i32, i32) {
    %c0_i32 = arith.constant 0 : i32
    %c0_i32_0 = arith.constant 0 : i32
    %c0_i32_1 = arith.constant 0 : i32
    return %c0_i32, %c0_i32_0 : i32, i32
  }
  func.func @transform_4(%arg0: i32) -> (i32, i32) {
    %c0_i32 = arith.constant 0 : i32
    %c0_i32_0 = arith.constant 0 : i32
    return %arg0, %c0_i32 : i32, i32
  }
}

module attributes {stable_mosaic.version = 11 : i64} {
  func.func @attention_kernel(%arg0: i32, %arg1: memref<8x8x32xf32, #tpu.memory_space<vmem>>, %arg2: memref<32x32xbf16, #tpu.memory_space<vmem>>, %arg3: memref<1x32xf32, #tpu.memory_space<vmem>>, %arg4: memref<1x32xf32, #tpu.memory_space<vmem>>, %arg5: memref<8x32xf32, #tpu.memory_space<vmem>>) attributes {dimension_semantics = [#tpu.dimension_semantics<parallel>], iteration_bounds = array<i64: 1>, scalar_prefetch = 0 : i64, scratch_operands = 0 : i64, tpu.core_type = #tpu.core_type<tc>, window_params = [{transform_indices = @transform_0, window_bounds = array<i64: 8, 8, 32>}, {pipeline_mode = #tpu.pipeline_mode<synchronous>, transform_indices = @transform_1, window_bounds = array<i64: 32, 32>}, {pipeline_mode = #tpu.pipeline_mode<synchronous>, transform_indices = @transform_2, window_bounds = array<i64: 1, 32>}, {pipeline_mode = #tpu.pipeline_mode<synchronous>, transform_indices = @transform_3, window_bounds = array<i64: 1, 32>}, {transform_indices = @transform_4, window_bounds = array<i64: 8, 32>}]} {
    %c0 = arith.constant 0 : index
    %c0_0 = arith.constant 0 : index
    %c0_1 = arith.constant 0 : index
    %0 = vector.load %arg1[%c0, %c0_0, %c0_1] : memref<8x8x32xf32, #tpu.memory_space<vmem>>, vector<8x8x32xf32>
    %1 = vector.shape_cast %0 : vector<8x8x32xf32> to vector<64x32xf32>
    %2 = arith.truncf %1 : vector<64x32xf32> to vector<64x32xbf16>
    %c0_2 = arith.constant 0 : index
    %c0_3 = arith.constant 0 : index
    %3 = vector.load %arg2[%c0_2, %c0_3] : memref<32x32xbf16, #tpu.memory_space<vmem>>, vector<32x32xbf16>
    %cst = arith.constant dense<0.000000e+00> : vector<64x32xf32>
    %4 = tpu.matmul %2, %3, %cst {dimension_numbers = #tpu.dot_dimension_numbers<[1], [0], [0], [1], [0, 0, 1, 1], [], []>} : vector<64x32xbf16>, vector<32x32xbf16>, vector<64x32xf32> -> vector<64x32xf32>
    %c0_4 = arith.constant 0 : index
    %c0_5 = arith.constant 0 : index
    %5 = vector.load %arg3[%c0_4, %c0_5] : memref<1x32xf32, #tpu.memory_space<vmem>>, vector<1x32xf32>
    %6 = vector.broadcast %5 : vector<1x32xf32> to vector<64x32xf32>
    %7 = arith.addf %4, %6 : vector<64x32xf32>
    %8 = math.tanh %7 : vector<64x32xf32>
    %9 = vector.shape_cast %8 : vector<64x32xf32> to vector<8x8x32xf32>
    %c0_6 = arith.constant 0 : index
    %c0_7 = arith.constant 0 : index
    %10 = vector.load %arg4[%c0_6, %c0_7] : memref<1x32xf32, #tpu.memory_space<vmem>>, vector<1x32xf32>
    %11 = vector.shape_cast %10 : vector<1x32xf32> to vector<1x1x32xf32>
    %12 = vector.broadcast %11 : vector<1x1x32xf32> to vector<8x8x32xf32>
    %13 = arith.mulf %9, %12 : vector<8x8x32xf32>
    %cst_8 = arith.constant dense<0.000000e+00> : vector<8x8xf32>
    %14 = vector.multi_reduction <add>, %13, %cst_8 [2] : vector<8x8x32xf32> to vector<8x8xf32>
    %cst_9 = arith.constant dense<0xFF800000> : vector<8xf32>
    %15 = vector.multi_reduction <maximumf>, %14, %cst_9 [1] : vector<8x8xf32> to vector<8xf32>
    %16 = vector.shape_cast %15 : vector<8xf32> to vector<8x1xf32>
    %17 = vector.broadcast %16 : vector<8x1xf32> to vector<8x8xf32>
    %18 = arith.subf %14, %17 : vector<8x8xf32>
    %19 = math.exp %18 : vector<8x8xf32>
    %cst_10 = arith.constant dense<0.000000e+00> : vector<8xf32>
    %20 = vector.multi_reduction <add>, %19, %cst_10 [1] : vector<8x8xf32> to vector<8xf32>
    %21 = vector.shape_cast %20 : vector<8xf32> to vector<8x1xf32>
    %22 = tpu.reciprocal %21 {approx = true} : vector<8x1xf32> -> vector<8x1xf32>
    %23 = vector.broadcast %22 : vector<8x1xf32> to vector<8x8xf32>
    %24 = arith.mulf %19, %23 : vector<8x8xf32>
    %25 = vector.shape_cast %24 : vector<8x8xf32> to vector<8x8x1xf32>
    %26 = vector.broadcast %25 : vector<8x8x1xf32> to vector<8x8x32xf32>
    %27 = arith.mulf %26, %0 : vector<8x8x32xf32>
    %cst_11 = arith.constant dense<0.000000e+00> : vector<8x32xf32>
    %28 = vector.multi_reduction <add>, %27, %cst_11 [1] : vector<8x8x32xf32> to vector<8x32xf32>
    %c0_12 = arith.constant 0 : index
    %c0_13 = arith.constant 0 : index
    %29 = vector.load %arg5[%c0_12, %c0_13] : memref<8x32xf32, #tpu.memory_space<vmem>>, vector<8x32xf32>
    tpu.vector_store %arg5[%c0_12, %c0_13], %28 {strides = array<i32>} : memref<8x32xf32, #tpu.memory_space<vmem>>, vector<8x32xf32>,
    return
  }
  func.func @transform_0(%arg0: i32) -> (i32, i32, i32) {
    %c0_i32 = arith.constant 0 : i32
    %c0_i32_0 = arith.constant 0 : i32
    %c0_i32_1 = arith.constant 0 : i32
    return %arg0, %c0_i32, %c0_i32_0 : i32, i32, i32
  }
  func.func @transform_1(%arg0: i32) -> (i32, i32) {
    %c0_i32 = arith.constant 0 : i32
    %c0_i32_0 = arith.constant 0 : i32
    %c0_i32_1 = arith.constant 0 : i32
    return %c0_i32, %c0_i32_0 : i32, i32
  }
  func.func @transform_2(%arg0: i32) -> (i32, i32) {
    %c0_i32 = arith.constant 0 : i32
    %c0_i32_0 = arith.constant 0 : i32
    %c0_i32_1 = arith.constant 0 : i32
    return %c0_i32, %c0_i32_0 : i32, i32
  }
  func.func @transform_3(%arg0: i32) -> (i32, i32) {
    %c0_i32 = arith.constant 0 : i32
    %c0_i32_0 = arith.constant 0 : i32
    %c0_i32_1 = arith.constant 0 : i32
    return %c0_i32, %c0_i32_0 : i32, i32
  }
  func.func @transform_4(%arg0: i32) -> (i32, i32) {
    %c0_i32 = arith.constant 0 : i32
    %c0_i32_0 = arith.constant 0 : i32
    return %arg0, %c0_i32 : i32, i32
  }
}

</mosaic_0001>

<bundles_post_ra>
// kernel: tpu_custom_call.1
= control target key start
LH: loop header
LB: loop body
LE: loop exit
PB: predicated region body
PF: predicated region fallthrough
CT: control target
= control target key end

     0   :  { %9 = vsyncpa [#allocation3], 0  ;;  %s959_s0 = inlined_call_operand.hbm [shape: f32[8,8,32], index: 0, kind: input, shape index: {}]   ;;  %s960_s1 = inlined_call_operand.hbm [shape: bf16[32,32], index: 1, kind: input, shape index: {}]   ;;  %s961_s2 = inlined_call_operand.vmem [shape: f32[1,32], index: 2, kind: input, shape index: {}]   ;;  %s962_s3 = inlined_call_operand.vmem [shape: f32[1,32], index: 3, kind: input, shape index: {}]   ;;  %s963_s4 = inlined_call_operand.hbm [shape: f32[8,32], index: 4, kind: output, shape index: {}]  }
   0x1   :  { %10 = vsyncpa [#allocation6], 0 }
   0x2   :  { %11 = vsyncpa [#allocation4], 0  ;;  %s743_s15 = smov [#allocation2]   ;;  %s671_s19 = scalar_lea.hbm %s959_s0, 1024 }
   0x3   :  { %s17_s16 = sshll.u32 %s743_s15, 4  ;;  %p672_p0 = scmp.ne.s32.totalorder %s959_s0, %s671_s19  ;;  %s18_s16 = int_to_ptr.vmem [resolvable:$true] %s17_s16 }
   0x4   :  { %p675_p1 = scmp.lt.u32.totalorder %s671_s19, %s959_s0 }
   0x6   :  { %p677_p2 = pnand %p675_p1, %p672_p0 }
   0x8   :  { %680 = shalt.err (!%p677_p2)
}
   0x9   :  { %s681_s24 = scalar_lea.vmem %s18_s16, 1024  ;;  %p686_p4 = scmp.lt.s32.totalorder %s18_s16, %s18_s16 }
   0xa   :  { %p682_p3 = scmp.ne.s32.totalorder %s18_s16, %s681_s24  ;;  %p687_p5 = scmp.lt.s32.totalorder %s681_s24, %s681_s24 }
   0xc   :  { %p688_p6 = por %p687_p5, %p686_p4 }
   0xe   :  { %p689_p7 = pnand %p688_p6, %p682_p3 }
  0x10   :  { %692 = shalt.err (!%p689_p7)
}
  0x11   :  { %s744_s25 = smov 128   ;;  %s745_s26 = smov 8  }
  0x12   :  { %23 = dma.hbm_to_vmem [thread:$0]  %s959_s0, 1024, %s18_s16, [#allocation3], %s744_s25, %s744_s25, %s745_s26  }
  0x13   :  { %s746_s29 = smov [#allocation5]   ;;  %s693_s7 = scalar_lea.hbm %s960_s1, 256 }
  0x14   :  { %s29_s30 = sshll.u32 %s746_s29, 4  ;;  %p694_p8 = scmp.ne.s32.totalorder %s960_s1, %s693_s7  ;;  %s30_s30 = int_to_ptr.vmem [resolvable:$true] %s29_s30 }
  0x15   :  { %p697_p9 = scmp.lt.u32.totalorder %s693_s7, %s960_s1 }
  0x17   :  { %p699_p10 = pnand %p697_p9, %p694_p8 }
  0x19   :  { %702 = shalt.err (!%p699_p10)
}
  0x1a   :  { %s703_s12 = scalar_lea.vmem %s30_s30, 256  ;;  %p708_p12 = scmp.lt.s32.totalorder %s30_s30, %s30_s30 }
  0x1b   :  { %p704_p11 = scmp.ne.s32.totalorder %s30_s30, %s703_s12  ;;  %p709_p13 = scmp.lt.s32.totalorder %s703_s12, %s703_s12 }
  0x1d   :  { %p710_p0 = por %p709_p13, %p708_p12 }
  0x1f   :  { %p711_p1 = pnand %p710_p0, %p704_p11 }
  0x21   :  { %714 = shalt.err (!%p711_p1)
}
  0x22   :  { %s747_s0 = smov 64   ;;  %s748_s13 = smov 4  }
  0x23   :  { %35 = dma.hbm_to_vmem [thread:$0]  %s960_s1, 256, %s30_s30, [#allocation6], %s747_s0, %s747_s0, %s748_s13  }
  0x24   :  { %737 = dma.done.wait [#allocation3], 1024  }
  0x25   :  { %738 = vsyncadd [#allocation3], 4294966272 }
  0x26   :  { %739 = dma.done.wait [#allocation6], 256  }
  0x27   :  { %740 = vsyncadd [#allocation6], 4294967040  ;;  %v635_v0 = vld [vmem:[#allocation5] sm:$0xff]   ;;  %v636_v1 = vld [vmem:[#allocation5 + $0x8] sm:$0xff]   ;;  %vm82_vm0 = vcmask 261120   ;;  %v215_v56 = vlaneseq  ;;  %vm249_vm1 = vcmask 1041409  }
  0x28   :  { %609 = vmatprep.subr.bf16.mxu0 %v635_v0  ;;  %621 = vmatprep.subr.bf16.mxu1 %v635_v0  ;;  %v800_v2 = vld [vmem:[#allocation2] sm:$0xff]  ;;  %v802_v3 = vld [vmem:[#allocation2 + $0x8] sm:$0xff]  ;;  %v804_v4 = vld [vmem:[#allocation2 + $0x10] sm:$0xff]  ;;  %vm251_vm2 = vcmask 1042434   ;;  %vm253_vm3 = vcmask 1043459   ;;  %vm255_vm4 = vcmask 1044484  }
  0x29   :  { %610 = vmatpush3.bf16.msra.mxu0 %v635_v0  ;;  %623 = vmatpush3.bf16.msra.mxu1 %v635_v0  ;;  %v55_v5 = vpack.c.bf16 %v802_v3, %v800_v2  ;;  %v808_v6 = vld [vmem:[#allocation2 + $0x18] sm:$0xff]  ;;  %v810_v7 = vld [vmem:[#allocation2 + $0x20] sm:$0xff]  ;;  %v812_v8 = vld [vmem:[#allocation2 + $0x28] sm:$0xff]  ;;  %v216_v57 = vand.u32 127, %v215_v56  ;;  %v842_v58 = vshrl.u32 %v215_v56, 7  ;;  %vm257_vm5 = vcmask 1045509  }
  0x2a   :  { %611 = vmatprep.subr.bf16.mxu0 %v636_v1  ;;  %622 = vmatprep.subr.bf16.mxu1 %v636_v1  ;;  %v57_v9 = vpack.c.bf16 %v812_v8, %v810_v7  ;;  %v816_v10 = vld [vmem:[#allocation2 + $0x30] sm:$0xff]  ;;  %v818_v11 = vld [vmem:[#allocation2 + $0x38] sm:$0xff]  ;;  %v56_v12 = vpack.c.bf16 %v808_v6, %v804_v4  ;;  %v595_v14 = vld [vmem:[%s961_s2] ss:$0 sm:$0xff]  ;;  %vm259_vm6 = vcmask 1046534   ;;  %vm261_vm7 = vcmask 1047559  }
  0x2b   :  { %613 = vmatprep.mubr.msk.bf16.mxu0 %vm82_vm0, %v55_v5  ;;  %v58_v13 = vpack.c.bf16 %v818_v11, %v816_v10  ;;  %v602_v31 = vld [vmem:[%s962_s3] ss:$0 sm:$0xff]  ;;  %v845_v61 = vsub.s32 %v216_v57, %v842_v58  ;;  %vm264_vm8 = vcmask 64512   ;;  %s750_s3 = smov [#allocation7]  }
  0x2c   :  { %617 = vmatprep.mubr.msk.bf16.mxu1 %vm82_vm0, %v57_v9  ;;  %s585_s18 = sshll.u32 %s750_s3, 4  ;;  %s586_s18 = int_to_ptr.vmem [resolvable:$true] %s585_s18 }
  0x2d   :  { %612 = vmatpush3.bf16.msra.mxu0 %v636_v1  ;;  %624 = vmatpush3.bf16.msra.mxu1 %v636_v1  ;;  %s715_s19 = scalar_lea.vmem %s586_s18, 128  ;;  %p720_p3 = scmp.lt.s32.totalorder %s586_s18, %s586_s18 }
  0x2e   :  { %p716_p2 = scmp.ne.s32.totalorder %s586_s18, %s715_s19  ;;  %p721_p4 = scmp.lt.s32.totalorder %s715_s19, %s715_s19 }
  0x30   :  { %614 = vmatmul.mubr.msk.bf16.vlgmr.msra.gmra.mrb[0].mxu0 %vm82_vm0, %v56_v12  ;;  %618 = vmatmul.mubr.msk.bf16.vlgmr.msra.gmra.mrb[0].mxu1 %vm82_vm0, %v58_v13  ;;  %p722_p5 = por %p721_p4, %p720_p3 }
  0x32   :  { %p723_p6 = pnand %p722_p5, %p716_p2 }
 0x103   :  { %v615_v15 = vpop.f32.mrb[0].mxu0  ;;  %v619_v16 = vpop.f32.mrb[0].mxu1 }
 0x104   :  { %v138_v17 = vadd.f32 %v615_v15, %v595_v14  ;;  %v129_v18 = vpop.f32.mrb[1].mxu0  ;;  %v145_v19 = vpop.f32.mrb[1].mxu1  ;;  %v154_v30 = vadd.f32 %v619_v16, %v595_v14 }
 0x105   :  { %v130_v20 = vadd.f32 %v595_v14, %v129_v18  ;;  %v616_v21 = vpop.f32.mrb[2].mxu0  ;;  %v620_v22 = vpop.f32.mrb[2].mxu1  ;;  %v146_v27 = vadd.f32 %v595_v14, %v145_v19 }
 0x106   :  { %637 = vtanh.f32 %v138_v17  ;;  %v141_v23 = vadd.f32 %v616_v21, %v595_v14  ;;  %v132_v24 = vpop.f32.mrb[3].mxu0  ;;  %v148_v25 = vpop.f32.mrb[3].mxu1  ;;  %v157_v29 = vadd.f32 %v620_v22, %v595_v14 }
 0x107   :  { %639 = vtanh.f32 %v130_v20  ;;  %v133_v26 = vadd.f32 %v595_v14, %v132_v24  ;;  %v149_v28 = vadd.f32 %v595_v14, %v148_v25 }
 0x108   :  { %641 = vtanh.f32 %v141_v23 }
 0x109   :  { %643 = vtanh.f32 %v133_v26 }
 0x10a   :  { %645 = vtanh.f32 %v146_v27 }
 0x10b   :  { %647 = vtanh.f32 %v149_v28  ;;  %v749_v28 = vmov 0  }
 0x10c   :  { %649 = vtanh.f32 %v157_v29  ;;  %634 = vset.pattern.permute.xlu0 %v749_v28  ;;  %633 = vset.pattern.permute.xlu1 %v749_v28  ;;  %v271_v29 = vsub.s32 0, %v842_v58 }
 0x10d   :  { %651 = vtanh.f32 %v154_v30  ;;  %v275_v30 = vsub.s32 1, %v842_v58 }
 0x110   :  { %v638_v32 = vpop.eup %637 }
 0x111   :  { %v640_v33 = vpop.eup %639  ;;  %v177_v34 = vmul.f32 %v638_v32, %v602_v31  ;;  %v283_v32 = vsub.s32 3, %v842_v58 }
 0x112   :  { %v642_v35 = vpop.eup %641  ;;  %v175_v36 = vmul.f32 %v640_v33, %v602_v31 }
 0x113   :  { %v644_v37 = vpop.eup %643  ;;  %v189_v38 = vsel %vm82_vm0, %v177_v34, 0.0  ;;  %v178_v39 = vmul.f32 %v642_v35, %v602_v31 }
 0x114   :  { %190 = vadd.xlane.f32.xlu1 %v189_v38  ;;  %v183_v40 = vsel %vm82_vm0, %v175_v36, 0.0  ;;  %v176_v41 = vmul.f32 %v644_v37, %v602_v31  ;;  %v646_v42 = vpop.eup %645  ;;  %v287_v37 = vsub.s32 4, %v842_v58 }
 0x115   :  { %184 = vadd.xlane.f32.xlu0 %v183_v40  ;;  %v648_v43 = vpop.eup %647  ;;  %v192_v44 = vsel %vm82_vm0, %v178_v39, 0.0  ;;  %v179_v48 = vmul.f32 %v646_v42, %v602_v31 }
 0x116   :  { %v650_v45 = vpop.eup %649  ;;  %v186_v46 = vsel %vm82_vm0, %v176_v41, 0.0  ;;  %v180_v47 = vmul.f32 %v648_v43, %v602_v31 }
 0x117   :  { %v652_v49 = vpop.eup %651  ;;  %v182_v51 = vmul.f32 %v650_v45, %v602_v31  ;;  %v195_v52 = vsel %vm82_vm0, %v179_v48, 0.0  ;;  %v295_v48 = vsub.s32 6, %v842_v58 }
 0x118   :  { %193 = vadd.xlane.f32.xlu1 %v192_v44  ;;  %v198_v50 = vsel %vm82_vm0, %v180_v47, 0.0  ;;  %v181_v53 = vmul.f32 %v652_v49, %v602_v31  ;;  %v279_v31 = vsub.s32 2, %v842_v58  ;;  %v291_v44 = vsub.s32 5, %v842_v58 }
 0x119   :  { %187 = vadd.xlane.f32.xlu0 %v186_v46  ;;  %v204_v54 = vsel %vm82_vm0, %v182_v51, 0.0 }
 0x11a   :  { %v201_v55 = vsel %vm82_vm0, %v181_v53, 0.0 }
 0x11c   :  { %199 = vadd.xlane.f32.xlu1 %v198_v50 }
 0x11d   :  { %196 = vadd.xlane.f32.xlu0 %v195_v52  ;;  %v299_v52 = vsub.s32 7, %v842_v58 }
 0x120   :  { %205 = vadd.xlane.f32.xlu1 %v204_v54 }
 0x121   :  { %202 = vadd.xlane.f32.xlu0 %v201_v55 }
 0x1a1   :  { %v191_v59 = vpop.xlane.xlu1 %190 }
 0x1a2   :  { %v185_v60 = vpop.xlane.xlu0 %184  ;;  %v228_v5 = vrot.slane %v191_v59, %v845_v61 }
 0x1a3   :  { %v220_v0 = vrot.slane %v185_v60, %v845_v61 }
 0x1a5   :  { %v194_v62 = vpop.xlane.xlu1 %193 }
 0x1a6   :  { %v188_v63 = vpop.xlane.xlu0 %187  ;;  %v232_v9 = vrot.slane %v194_v62, %v845_v61 }
 0x1a7   :  { %v224_v1 = vrot.slane %v188_v63, %v845_v61 }
 0x1a9   :  { %v250_v12 = vsel %vm249_vm1, %v224_v1, %v220_v0  ;;  %v200_v13 = vpop.xlane.xlu1 %199 }
 0x1aa   :  { %v252_v14 = vsel %vm251_vm2, %v228_v5, %v250_v12  ;;  %v197_v15 = vpop.xlane.xlu0 %196  ;;  %v240_v20 = vrot.slane %v200_v13, %v845_v61 }
 0x1ab   :  { %v254_v16 = vsel %vm253_vm3, %v232_v9, %v252_v14  ;;  %v236_v17 = vrot.slane %v197_v15, %v845_v61 }
 0x1ad   :  { %v256_v18 = vsel %vm255_vm4, %v236_v17, %v254_v16  ;;  %v856_v19 = vpop.xlane.xlu1 %205 }
 0x1ae   :  { %v203_v21 = vpop.xlane.xlu0 %202  ;;  %v248_v23 = vrot.slane %v856_v19, %v845_v61  ;;  %v258_v24 = vsel %vm257_vm5, %v240_v20, %v256_v18 }
 0x1af   :  { %v244_v22 = vrot.slane %v203_v21, %v845_v61 }
 0x1b1   :  { %v260_v25 = vsel %vm259_vm6, %v244_v22, %v258_v24 }
 0x1b2   :  { %v262_v26 = vsel %vm261_vm7, %v248_v23, %v260_v25 }
 0x1b3   :  { %v265_v27 = vsel %vm264_vm8, %v262_v26, -inf }
 0x1b4   :  { %266 = vmax.xlane.f32.xlu0 %v265_v27 }
 0x241   :  { %v267_v33 = vpop.xlane.xlu0 %266 }
 0x242   :  { %v272_v34 = vrot.slane %v267_v33, %v271_v29  ;;  %v276_v35 = vrot.slane %v267_v33, %v275_v30  ;;  %v280_v36 = vrot.slane %v267_v33, %v279_v31  ;;  %v284_v38 = vrot.slane %v267_v33, %v283_v32 }
 0x243   :  { %v288_v45 = vrot.slane %v267_v33, %v287_v37  ;;  %v292_v49 = vrot.slane %v267_v33, %v291_v44  ;;  %v296_v53 = vrot.slane %v267_v33, %v295_v48 }
 0x244   :  { %v309_v39 = vsub.f32 %v185_v60, %v272_v34  ;;  %v310_v40 = vsub.f32 %v188_v63, %v276_v35  ;;  %v311_v41 = vsub.f32 %v191_v59, %v280_v36  ;;  %v312_v46 = vsub.f32 %v194_v62, %v284_v38 }
 0x245   :  { %v313_v50 = vsub.f32 %v197_v15, %v288_v45  ;;  %v314_v54 = vsub.f32 %v200_v13, %v292_v49  ;;  %v300_v59 = vrot.slane %v267_v33, %v299_v52  ;;  %v315_v60 = vsub.f32 %v203_v21, %v296_v53 }
 0x246   :  { %v317_v42 = vmul.f32 1.442695, %v309_v39  ;;  %v319_v43 = vmul.f32 1.442695, %v310_v40  ;;  %v321_v47 = vmul.f32 1.442695, %v311_v41 }
 0x247   :  { %v323_v51 = vmul.f32 1.442695, %v312_v46  ;;  %v325_v55 = vmul.f32 1.442695, %v313_v50  ;;  %v327_v62 = vmul.f32 1.442695, %v314_v54  ;;  %v316_v0 = vsub.f32 %v856_v19, %v300_v59 }
 0x248   :  { %653 = vpow2.f32 %v317_v42  ;;  %v329_v1 = vmul.f32 1.442695, %v315_v60 }
 0x249   :  { %655 = vpow2.f32 %v319_v43  ;;  %v331_v9 = vmul.f32 1.442695, %v316_v0 }
 0x24a   :  { %657 = vpow2.f32 %v321_v47 }
 0x24b   :  { %659 = vpow2.f32 %v323_v51 }
 0x24c   :  { %661 = vpow2.f32 %v325_v55 }
 0x24d   :  { %663 = vpow2.f32 %v327_v62 }
 0x24e   :  { %665 = vpow2.f32 %v329_v1 }
 0x24f   :  { %667 = vpow2.f32 %v331_v9 }
 0x252   :  { %v654_v56 = vpop.eup %653 }
 0x253   :  { %v656_v57 = vpop.eup %655  ;;  %342 = vperm.xlu1 %633, %v654_v56  }
 0x254   :  { %345 = vperm.xlu0 %634, %v656_v57   ;;  %v658_v63 = vpop.eup %657 }
 0x255   :  { %v660_v5 = vpop.eup %659 }
 0x256   :  { %v662_v12 = vpop.eup %661 }
 0x257   :  { %348 = vperm.xlu1 %633, %v658_v63   ;;  %v664_v13 = vpop.eup %663 }
 0x258   :  { %v666_v14 = vpop.eup %665 }
 0x259   :  { %v668_v15 = vpop.eup %667 }
 0x25b   :  { %351 = vperm.xlu1 %633, %v660_v5  }
 0x25f   :  { %354 = vperm.xlu1 %633, %v662_v12  }
 0x263   :  { %357 = vperm.xlu1 %633, %v664_v13  }
 0x267   :  { %360 = vperm.xlu1 %633, %v666_v14  }
 0x26b   :  { %363 = vperm.xlu1 %633, %v668_v15  }
 0x2d2   :  { %v343_v16 = vpop.permute.xlu1 %342 }
 0x2d3   :  { %v346_v19 = vpop.permute.xlu0 %345  ;;  %v368_v23 = vrot.slane %v343_v16, %v845_v61 }
 0x2d4   :  { %v372_v22 = vrot.slane %v346_v19, %v845_v61 }
 0x2d6   :  { %v349_v17 = vpop.permute.xlu1 %348  ;;  %v397_v28 = vsel %vm249_vm1, %v372_v22, %v368_v23 }
 0x2d7   :  { %v376_v24 = vrot.slane %v349_v17, %v845_v61 }
 0x2d9   :  { %v398_v34 = vsel %vm251_vm2, %v376_v24, %v397_v28 }
 0x2da   :  { %v352_v18 = vpop.permute.xlu1 %351 }
 0x2db   :  { %v380_v25 = vrot.slane %v352_v18, %v845_v61 }
 0x2dd   :  { %v399_v36 = vsel %vm253_vm3, %v380_v25, %v398_v34 }
 0x2de   :  { %v355_v20 = vpop.permute.xlu1 %354 }
 0x2df   :  { %v384_v26 = vrot.slane %v355_v20, %v845_v61 }
 0x2e1   :  { %v400_v38 = vsel %vm255_vm4, %v384_v26, %v399_v36 }
 0x2e2   :  { %v358_v21 = vpop.permute.xlu1 %357 }
 0x2e3   :  { %v388_v33 = vrot.slane %v358_v21, %v845_v61 }
 0x2e5   :  { %v401_v40 = vsel %vm257_vm5, %v388_v33, %v400_v38 }
 0x2e6   :  { %v361_v27 = vpop.permute.xlu1 %360 }
 0x2e7   :  { %v392_v35 = vrot.slane %v361_v27, %v845_v61 }
 0x2e9   :  { %v402_v42 = vsel %vm259_vm6, %v392_v35, %v401_v40 }
 0x2ea   :  { %v364_v39 = vpop.permute.xlu1 %363 }
 0x2eb   :  { %v396_v41 = vrot.slane %v364_v39, %v845_v61 }
 0x2ed   :  { %v403_v43 = vsel %vm261_vm7, %v396_v41, %v402_v42 }
 0x2ee   :  { %v405_v45 = vsel %vm264_vm8, %v403_v43, 0.0 }
 0x2ef   :  { %406 = vadd.xlane.f32.xlu1 %v405_v45 }
 0x37c   :  { %v407_v46 = vpop.xlane.xlu1 %406 }
 0x37d   :  { %669 = vrcp.f32 %v407_v46 }
 0x387   :  { %v670_v47 = vpop.eup %669 }
 0x388   :  { %v413_v49 = vrot.slane %v670_v47, %v271_v29  ;;  %v417_v51 = vrot.slane %v670_v47, %v275_v30  ;;  %v421_v61 = vrot.slane %v670_v47, %v279_v31  ;;  %v425_v55 = vrot.slane %v670_v47, %v283_v32 }
 0x389   :  { %v429_v60 = vrot.slane %v670_v47, %v287_v37  ;;  %v433_v30 = vrot.slane %v670_v47, %v291_v44  ;;  %v437_v31 = vrot.slane %v670_v47, %v295_v48  ;;  %v441_v32 = vrot.slane %v670_v47, %v299_v52 }
 0x38a   :  { %v450_v50 = vmul.f32 %v654_v56, %v413_v49  ;;  %v451_v53 = vmul.f32 %v656_v57, %v417_v51  ;;  %v452_v54 = vmul.f32 %v658_v63, %v421_v61  ;;  %v453_v59 = vmul.f32 %v660_v5, %v425_v55 }
 0x38b   :  { %v454_v29 = vmul.f32 %v662_v12, %v429_v60  ;;  %v455_v56 = vmul.f32 %v664_v13, %v433_v30  ;;  %v456_v57 = vmul.f32 %v666_v14, %v437_v31  ;;  %v457_v62 = vmul.f32 %v668_v15, %v441_v32 }
 0x38c   :  { %460 = vperm.xlu0 %634, %v450_v50  }
 0x390   :  { %465 = vperm.xlu0 %634, %v451_v53  }
 0x394   :  { %470 = vperm.xlu0 %634, %v452_v54  }
 0x398   :  { %475 = vperm.xlu0 %634, %v453_v59  }
 0x39c   :  { %480 = vperm.xlu0 %634, %v454_v29  }
 0x3a0   :  { %485 = vperm.xlu0 %634, %v455_v56  }
 0x3a4   :  { %490 = vperm.xlu0 %634, %v456_v57  }
 0x3a8   :  { %495 = vperm.xlu0 %634, %v457_v62  }
 0x40b   :  { %v461_v63 = vpop.permute.xlu0 %460 }
 0x40c   :  { %v498_v44 = vmul.f32 %v461_v63, %v800_v2 }
 0x40e   :  { %v506_v58 = vsel %vm82_vm0, %v498_v44, 0.0 }
 0x40f   :  { %v466_v37 = vpop.permute.xlu0 %465  ;;  %v507_v16 = vrot.slane %v506_v58, 4 }
 0x410   :  { %v499_v0 = vmul.f32 %v466_v37, %v802_v3 }
 0x411   :  { %v508_v19 = vadd.f32 %v507_v16, %v506_v58 }
 0x412   :  { %v513_v9 = vsel %vm82_vm0, %v499_v0, 0.0 }
 0x413   :  { %v471_v1 = vpop.permute.xlu0 %470  ;;  %v514_v13 = vrot.slane %v513_v9, 4  ;;  %v509_v28 = vrot.slane %v508_v19, 2 }
 0x414   :  { %v500_v5 = vmul.f32 %v471_v1, %v804_v4 }
 0x415   :  { %v515_v18 = vadd.f32 %v514_v13, %v513_v9  ;;  %v510_v42 = vadd.f32 %v509_v28, %v508_v19 }
 0x416   :  { %v520_v48 = vsel %vm82_vm0, %v500_v5, 0.0 }
 0x417   :  { %v476_v12 = vpop.permute.xlu0 %475  ;;  %v521_v14 = vrot.slane %v520_v48, 4 }
 0x418   :  { %v501_v52 = vmul.f32 %v476_v12, %v808_v6  ;;  %v516_v6 = vrot.slane %v515_v18, 2 }
 0x419   :  { %v522_v4 = vadd.f32 %v521_v14, %v520_v48 }
 0x41a   :  { %v527_v15 = vsel %vm82_vm0, %v501_v52, 0.0  ;;  %v517_v38 = vadd.f32 %v516_v6, %v515_v18 }
 0x41b   :  { %v528_v3 = vrot.slane %v527_v15, 4  ;;  %v481_v17 = vpop.permute.xlu0 %480  ;;  %v523_v26 = vrot.slane %v522_v4, 2 }
 0x41c   :  { %v502_v2 = vmul.f32 %v481_v17, %v810_v7  ;;  %v518_v50 = vrot.slane %v517_v38, 1 }
 0x41d   :  { %v529_v21 = vadd.f32 %v528_v3, %v527_v15  ;;  %v524_v40 = vadd.f32 %v523_v26, %v522_v4 }
 0x41e   :  { %v534_v20 = vsel %vm82_vm0, %v502_v2, 0.0  ;;  %v519_v30 = vadd.f32 %v518_v50, %v517_v38 }
 0x41f   :  { %v535_v22 = vrot.slane %v534_v20, 4  ;;  %v486_v23 = vpop.permute.xlu0 %485  ;;  %v530_v33 = vrot.slane %v529_v21, 2  ;;  %v525_v61 = vrot.slane %v524_v40, 1 }
 0x420   :  { %v503_v24 = vmul.f32 %v486_v23, %v812_v8 }
 0x421   :  { %v536_v25 = vadd.f32 %v535_v22, %v534_v20  ;;  %v531_v43 = vadd.f32 %v530_v33, %v529_v21  ;;  %v526_v32 = vadd.f32 %v525_v61, %v524_v40 }
 0x422   :  { %v541_v27 = vsel %vm82_vm0, %v503_v24, 0.0 }
 0x423   :  { %v542_v34 = vrot.slane %v541_v27, 4  ;;  %v491_v35 = vpop.permute.xlu0 %490  ;;  %v537_v7 = vrot.slane %v536_v25, 2  ;;  %v532_v55 = vrot.slane %v531_v43, 1 }
 0x424   :  { %v504_v36 = vmul.f32 %v491_v35, %v816_v10  ;;  %v511_v10 = vrot.slane %v510_v42, 1 }
 0x425   :  { %v543_v39 = vadd.f32 %v542_v34, %v541_v27  ;;  %v538_v47 = vadd.f32 %v537_v7, %v536_v25  ;;  %v533_v63 = vadd.f32 %v532_v55, %v531_v43 }
 0x426   :  { %v548_v41 = vsel %vm82_vm0, %v504_v36, 0.0  ;;  %v512_v62 = vadd.f32 %v511_v10, %v510_v42 }
 0x427   :  { %v544_v8 = vrot.slane %v543_v39, 2  ;;  %v549_v45 = vrot.slane %v548_v41, 4  ;;  %v496_v46 = vpop.permute.xlu0 %495  ;;  %v539_v29 = vrot.slane %v538_v47, 1 }
 0x428   :  { %v505_v49 = vmul.f32 %v496_v46, %v818_v11  ;;  %v570_v1 = vsel %vm249_vm1, %v519_v30, %v512_v62 }
 0x429   :  { %v545_v51 = vadd.f32 %v544_v8, %v543_v39  ;;  %v550_v53 = vadd.f32 %v549_v45, %v548_v41  ;;  %v540_v0 = vadd.f32 %v539_v29, %v538_v47  ;;  %v571_v9 = vsel %vm251_vm2, %v526_v32, %v570_v1 }
 0x42a   :  { %v555_v54 = vsel %vm82_vm0, %v505_v49, 0.0  ;;  %v572_v12 = vsel %vm253_vm3, %v533_v63, %v571_v9 }
 0x42b   :  { %v551_v59 = vrot.slane %v550_v53, 2  ;;  %v556_v60 = vrot.slane %v555_v54, 4  ;;  %v546_v56 = vrot.slane %v545_v51, 1  ;;  %v573_v52 = vsel %vm255_vm4, %v540_v0, %v572_v12 }
 0x42d   :  { %v552_v31 = vadd.f32 %v551_v59, %v550_v53  ;;  %v557_v57 = vadd.f32 %v556_v60, %v555_v54  ;;  %v547_v44 = vadd.f32 %v546_v56, %v545_v51 }
 0x42f   :  { %v553_v37 = vrot.slane %v552_v31, 1  ;;  %v558_v11 = vrot.slane %v557_v57, 2  ;;  %v574_v14 = vsel %vm257_vm5, %v547_v44, %v573_v52 }
 0x431   :  { %v559_v5 = vadd.f32 %v558_v11, %v557_v57  ;;  %v554_v48 = vadd.f32 %v553_v37, %v552_v31 }
 0x433   :  { %v560_v58 = vrot.slane %v559_v5, 1  ;;  %v575_v15 = vsel %vm259_vm6, %v554_v48, %v574_v14 }
 0x435   :  { %v561_v13 = vadd.f32 %v560_v58, %v559_v5 }
 0x437   :  { %v576_v16 = vsel %vm261_vm7, %v561_v13, %v575_v15 }
 0x438   :  { %578 = vst.msk [vmem:[#allocation7] sm:$0xff] %vm82_vm0, %v576_v16 }
 0x439   :  { %726 = shalt.err (!%p723_p6)
}
 0x43a   :  { %s727_s22 = scalar_lea.hbm %s963_s4, 128 }
 0x43b   :  { %p728_p7 = scmp.ne.s32.totalorder %s963_s4, %s727_s22  ;;  %p731_p8 = scmp.lt.u32.totalorder %s727_s22, %s963_s4 }
 0x43d   :  { %p733_p9 = pnand %p731_p8, %p728_p7 }
 0x43f   :  { %736 = shalt.err (!%p733_p9)
}
 0x440   :  { %588 = dma.vmem_to_hbm [thread:$0]  %s586_s18, 128, %s963_s4, [#allocation4]  }
 0x441   :  { %741 = dma.done.wait [#allocation4], 128  }
 0x442   :  { %742 = vsyncadd [#allocation4], 4294967168 }
 0x443   :  { %592 = vsyncpa [#allocation3], 1 }
 0x444   :  { %593 = vsyncpa [#allocation6], 1 }
 0x445   :  { %594 = vsyncpa [#allocation4], 1 }

// kernel: tpu_custom_call.1
= control target key start
LH: loop header
LB: loop body
LE: loop exit
PB: predicated region body
PF: predicated region fallthrough
CT: control target
= control target key end

     0   :  { %9 = vsyncpa [#allocation3], 0  ;;  %s959_s0 = inlined_call_operand.hbm [shape: f32[8,8,32], index: 0, kind: input, shape index: {}]   ;;  %s960_s1 = inlined_call_operand.hbm [shape: bf16[32,32], index: 1, kind: input, shape index: {}]   ;;  %s961_s2 = inlined_call_operand.vmem [shape: f32[1,32], index: 2, kind: input, shape index: {}]   ;;  %s962_s3 = inlined_call_operand.vmem [shape: f32[1,32], index: 3, kind: input, shape index: {}]   ;;  %s963_s4 = inlined_call_operand.hbm [shape: f32[8,32], index: 4, kind: output, shape index: {}]  }
   0x1   :  { %10 = vsyncpa [#allocation6], 0 }
   0x2   :  { %11 = vsyncpa [#allocation4], 0  ;;  %s743_s15 = smov [#allocation2]   ;;  %s671_s19 = scalar_lea.hbm %s959_s0, 1024 }
   0x3   :  { %s17_s16 = sshll.u32 %s743_s15, 4  ;;  %p672_p0 = scmp.ne.s32.totalorder %s959_s0, %s671_s19  ;;  %s18_s16 = int_to_ptr.vmem [resolvable:$true] %s17_s16 }
   0x4   :  { %p675_p1 = scmp.lt.u32.totalorder %s671_s19, %s959_s0 }
   0x6   :  { %p677_p2 = pnand %p675_p1, %p672_p0 }
   0x8   :  { %680 = shalt.err (!%p677_p2)
}
   0x9   :  { %s681_s24 = scalar_lea.vmem %s18_s16, 1024  ;;  %p686_p4 = scmp.lt.s32.totalorder %s18_s16, %s18_s16 }
   0xa   :  { %p682_p3 = scmp.ne.s32.totalorder %s18_s16, %s681_s24  ;;  %p687_p5 = scmp.lt.s32.totalorder %s681_s24, %s681_s24 }
   0xc   :  { %p688_p6 = por %p687_p5, %p686_p4 }
   0xe   :  { %p689_p7 = pnand %p688_p6, %p682_p3 }
  0x10   :  { %692 = shalt.err (!%p689_p7)
}
  0x11   :  { %s744_s25 = smov 128   ;;  %s745_s26 = smov 8  }
  0x12   :  { %23 = dma.hbm_to_vmem [thread:$0]  %s959_s0, 1024, %s18_s16, [#allocation3], %s744_s25, %s744_s25, %s745_s26  }
  0x13   :  { %s746_s29 = smov [#allocation5]   ;;  %s693_s7 = scalar_lea.hbm %s960_s1, 256 }
  0x14   :  { %s29_s30 = sshll.u32 %s746_s29, 4  ;;  %p694_p8 = scmp.ne.s32.totalorder %s960_s1, %s693_s7  ;;  %s30_s30 = int_to_ptr.vmem [resolvable:$true] %s29_s30 }
  0x15   :  { %p697_p9 = scmp.lt.u32.totalorder %s693_s7, %s960_s1 }
  0x17   :  { %p699_p10 = pnand %p697_p9, %p694_p8 }
  0x19   :  { %702 = shalt.err (!%p699_p10)
}
  0x1a   :  { %s703_s12 = scalar_lea.vmem %s30_s30, 256  ;;  %p708_p12 = scmp.lt.s32.totalorder %s30_s30, %s30_s30 }
  0x1b   :  { %p704_p11 = scmp.ne.s32.totalorder %s30_s30, %s703_s12  ;;  %p709_p13 = scmp.lt.s32.totalorder %s703_s12, %s703_s12 }
  0x1d   :  { %p710_p0 = por %p709_p13, %p708_p12 }
  0x1f   :  { %p711_p1 = pnand %p710_p0, %p704_p11 }
  0x21   :  { %714 = shalt.err (!%p711_p1)
}
  0x22   :  { %s747_s0 = smov 64   ;;  %s748_s13 = smov 4  }
  0x23   :  { %35 = dma.hbm_to_vmem [thread:$0]  %s960_s1, 256, %s30_s30, [#allocation6], %s747_s0, %s747_s0, %s748_s13  }
  0x24   :  { %737 = dma.done.wait [#allocation3], 1024  }
  0x25   :  { %738 = vsyncadd [#allocation3], 4294966272 }
  0x26   :  { %739 = dma.done.wait [#allocation6], 256  }
  0x27   :  { %740 = vsyncadd [#allocation6], 4294967040  ;;  %v635_v0 = vld [vmem:[#allocation5] sm:$0xff]   ;;  %v636_v1 = vld [vmem:[#allocation5 + $0x8] sm:$0xff]   ;;  %vm82_vm0 = vcmask 261120   ;;  %v215_v56 = vlaneseq  ;;  %vm249_vm1 = vcmask 1041409  }
  0x28   :  { %609 = vmatprep.subr.bf16.mxu0 %v635_v0  ;;  %621 = vmatprep.subr.bf16.mxu1 %v635_v0  ;;  %v800_v2 = vld [vmem:[#allocation2] sm:$0xff]  ;;  %v802_v3 = vld [vmem:[#allocation2 + $0x8] sm:$0xff]  ;;  %v804_v4 = vld [vmem:[#allocation2 + $0x10] sm:$0xff]  ;;  %vm251_vm2 = vcmask 1042434   ;;  %vm253_vm3 = vcmask 1043459   ;;  %vm255_vm4 = vcmask 1044484  }
  0x29   :  { %610 = vmatpush3.bf16.msra.mxu0 %v635_v0  ;;  %623 = vmatpush3.bf16.msra.mxu1 %v635_v0  ;;  %v55_v5 = vpack.c.bf16 %v802_v3, %v800_v2  ;;  %v808_v6 = vld [vmem:[#allocation2 + $0x18] sm:$0xff]  ;;  %v810_v7 = vld [vmem:[#allocation2 + $0x20] sm:$0xff]  ;;  %v812_v8 = vld [vmem:[#allocation2 + $0x28] sm:$0xff]  ;;  %v216_v57 = vand.u32 127, %v215_v56  ;;  %v842_v58 = vshrl.u32 %v215_v56, 7  ;;  %vm257_vm5 = vcmask 1045509  }
  0x2a   :  { %611 = vmatprep.subr.bf16.mxu0 %v636_v1  ;;  %622 = vmatprep.subr.bf16.mxu1 %v636_v1  ;;  %v57_v9 = vpack.c.bf16 %v812_v8, %v810_v7  ;;  %v816_v10 = vld [vmem:[#allocation2 + $0x30] sm:$0xff]  ;;  %v818_v11 = vld [vmem:[#allocation2 + $0x38] sm:$0xff]  ;;  %v56_v12 = vpack.c.bf16 %v808_v6, %v804_v4  ;;  %v595_v14 = vld [vmem:[%s961_s2] ss:$0 sm:$0xff]  ;;  %vm259_vm6 = vcmask 1046534   ;;  %vm261_vm7 = vcmask 1047559  }
  0x2b   :  { %613 = vmatprep.mubr.msk.bf16.mxu0 %vm82_vm0, %v55_v5  ;;  %v58_v13 = vpack.c.bf16 %v818_v11, %v816_v10  ;;  %v602_v31 = vld [vmem:[%s962_s3] ss:$0 sm:$0xff]  ;;  %v845_v61 = vsub.s32 %v216_v57, %v842_v58  ;;  %vm264_vm8 = vcmask 64512   ;;  %s750_s3 = smov [#allocation7]  }
  0x2c   :  { %617 = vmatprep.mubr.msk.bf16.mxu1 %vm82_vm0, %v57_v9  ;;  %s585_s18 = sshll.u32 %s750_s3, 4  ;;  %s586_s18 = int_to_ptr.vmem [resolvable:$true] %s585_s18 }
  0x2d   :  { %612 = vmatpush3.bf16.msra.mxu0 %v636_v1  ;;  %624 = vmatpush3.bf16.msra.mxu1 %v636_v1  ;;  %s715_s19 = scalar_lea.vmem %s586_s18, 128  ;;  %p720_p3 = scmp.lt.s32.totalorder %s586_s18, %s586_s18 }
  0x2e   :  { %p716_p2 = scmp.ne.s32.totalorder %s586_s18, %s715_s19  ;;  %p721_p4 = scmp.lt.s32.totalorder %s715_s19, %s715_s19 }
  0x30   :  { %614 = vmatmul.mubr.msk.bf16.vlgmr.msra.gmra.mrb[0].mxu0 %vm82_vm0, %v56_v12  ;;  %618 = vmatmul.mubr.msk.bf16.vlgmr.msra.gmra.mrb[0].mxu1 %vm82_vm0, %v58_v13  ;;  %p722_p5 = por %p721_p4, %p720_p3 }
  0x32   :  { %p723_p6 = pnand %p722_p5, %p716_p2 }
 0x103   :  { %v615_v15 = vpop.f32.mrb[0].mxu0  ;;  %v619_v16 = vpop.f32.mrb[0].mxu1 }
 0x104   :  { %v138_v17 = vadd.f32 %v615_v15, %v595_v14  ;;  %v129_v18 = vpop.f32.mrb[1].mxu0  ;;  %v145_v19 = vpop.f32.mrb[1].mxu1  ;;  %v154_v30 = vadd.f32 %v619_v16, %v595_v14 }
 0x105   :  { %v130_v20 = vadd.f32 %v595_v14, %v129_v18  ;;  %v616_v21 = vpop.f32.mrb[2].mxu0  ;;  %v620_v22 = vpop.f32.mrb[2].mxu1  ;;  %v146_v27 = vadd.f32 %v595_v14, %v145_v19 }
 0x106   :  { %637 = vtanh.f32 %v138_v17  ;;  %v141_v23 = vadd.f32 %v616_v21, %v595_v14  ;;  %v132_v24 = vpop.f32.mrb[3].mxu0  ;;  %v148_v25 = vpop.f32.mrb[3].mxu1  ;;  %v157_v29 = vadd.f32 %v620_v22, %v595_v14 }
 0x107   :  { %639 = vtanh.f32 %v130_v20  ;;  %v133_v26 = vadd.f32 %v595_v14, %v132_v24  ;;  %v149_v28 = vadd.f32 %v595_v14, %v148_v25 }
 0x108   :  { %641 = vtanh.f32 %v141_v23 }
 0x109   :  { %643 = vtanh.f32 %v133_v26 }
 0x10a   :  { %645 = vtanh.f32 %v146_v27 }
 0x10b   :  { %647 = vtanh.f32 %v149_v28  ;;  %v749_v28 = vmov 0  }
 0x10c   :  { %649 = vtanh.f32 %v157_v29  ;;  %634 = vset.pattern.permute.xlu0 %v749_v28  ;;  %633 = vset.pattern.permute.xlu1 %v749_v28  ;;  %v271_v29 = vsub.s32 0, %v842_v58 }
 0x10d   :  { %651 = vtanh.f32 %v154_v30  ;;  %v275_v30 = vsub.s32 1, %v842_v58 }
 0x110   :  { %v638_v32 = vpop.eup %637 }
 0x111   :  { %v640_v33 = vpop.eup %639  ;;  %v177_v34 = vmul.f32 %v638_v32, %v602_v31  ;;  %v283_v32 = vsub.s32 3, %v842_v58 }
 0x112   :  { %v642_v35 = vpop.eup %641  ;;  %v175_v36 = vmul.f32 %v640_v33, %v602_v31 }
 0x113   :  { %v644_v37 = vpop.eup %643  ;;  %v189_v38 = vsel %vm82_vm0, %v177_v34, 0.0  ;;  %v178_v39 = vmul.f32 %v642_v35, %v602_v31 }
 0x114   :  { %190 = vadd.xlane.f32.xlu1 %v189_v38  ;;  %v183_v40 = vsel %vm82_vm0, %v175_v36, 0.0  ;;  %v176_v41 = vmul.f32 %v644_v37, %v602_v31  ;;  %v646_v42 = vpop.eup %645  ;;  %v287_v37 = vsub.s32 4, %v842_v58 }
 0x115   :  { %184 = vadd.xlane.f32.xlu0 %v183_v40  ;;  %v648_v43 = vpop.eup %647  ;;  %v192_v44 = vsel %vm82_vm0, %v178_v39, 0.0  ;;  %v179_v48 = vmul.f32 %v646_v42, %v602_v31 }
 0x116   :  { %v650_v45 = vpop.eup %649  ;;  %v186_v46 = vsel %vm82_vm0, %v176_v41, 0.0  ;;  %v180_v47 = vmul.f32 %v648_v43, %v602_v31 }
 0x117   :  { %v652_v49 = vpop.eup %651  ;;  %v182_v51 = vmul.f32 %v650_v45, %v602_v31  ;;  %v195_v52 = vsel %vm82_vm0, %v179_v48, 0.0  ;;  %v295_v48 = vsub.s32 6, %v842_v58 }
 0x118   :  { %193 = vadd.xlane.f32.xlu1 %v192_v44  ;;  %v198_v50 = vsel %vm82_vm0, %v180_v47, 0.0  ;;  %v181_v53 = vmul.f32 %v652_v49, %v602_v31  ;;  %v279_v31 = vsub.s32 2, %v842_v58  ;;  %v291_v44 = vsub.s32 5, %v842_v58 }
 0x119   :  { %187 = vadd.xlane.f32.xlu0 %v186_v46  ;;  %v204_v54 = vsel %vm82_vm0, %v182_v51, 0.0 }
 0x11a   :  { %v201_v55 = vsel %vm82_vm0, %v181_v53, 0.0 }
 0x11c   :  { %199 = vadd.xlane.f32.xlu1 %v198_v50 }
 0x11d   :  { %196 = vadd.xlane.f32.xlu0 %v195_v52  ;;  %v299_v52 = vsub.s32 7, %v842_v58 }
 0x120   :  { %205 = vadd.xlane.f32.xlu1 %v204_v54 }
 0x121   :  { %202 = vadd.xlane.f32.xlu0 %v201_v55 }
 0x1a1   :  { %v191_v59 = vpop.xlane.xlu1 %190 }
 0x1a2   :  { %v185_v60 = vpop.xlane.xlu0 %184  ;;  %v228_v5 = vrot.slane %v191_v59, %v845_v61 }
 0x1a3   :  { %v220_v0 = vrot.slane %v185_v60, %v845_v61 }
 0x1a5   :  { %v194_v62 = vpop.xlane.xlu1 %193 }
 0x1a6   :  { %v188_v63 = vpop.xlane.xlu0 %187  ;;  %v232_v9 = vrot.slane %v194_v62, %v845_v61 }
 0x1a7   :  { %v224_v1 = vrot.slane %v188_v63, %v845_v61 }
 0x1a9   :  { %v250_v12 = vsel %vm249_vm1, %v224_v1, %v220_v0  ;;  %v200_v13 = vpop.xlane.xlu1 %199 }
 0x1aa   :  { %v252_v14 = vsel %vm251_vm2, %v228_v5, %v250_v12  ;;  %v197_v15 = vpop.xlane.xlu0 %196  ;;  %v240_v20 = vrot.slane %v200_v13, %v845_v61 }
 0x1ab   :  { %v254_v16 = vsel %vm253_vm3, %v232_v9, %v252_v14  ;;  %v236_v17 = vrot.slane %v197_v15, %v845_v61 }
 0x1ad   :  { %v256_v18 = vsel %vm255_vm4, %v236_v17, %v254_v16  ;;  %v856_v19 = vpop.xlane.xlu1 %205 }
 0x1ae   :  { %v203_v21 = vpop.xlane.xlu0 %202  ;;  %v248_v23 = vrot.slane %v856_v19, %v845_v61  ;;  %v258_v24 = vsel %vm257_vm5, %v240_v20, %v256_v18 }
 0x1af   :  { %v244_v22 = vrot.slane %v203_v21, %v845_v61 }
 0x1b1   :  { %v260_v25 = vsel %vm259_vm6, %v244_v22, %v258_v24 }
 0x1b2   :  { %v262_v26 = vsel %vm261_vm7, %v248_v23, %v260_v25 }
 0x1b3   :  { %v265_v27 = vsel %vm264_vm8, %v262_v26, -inf }
 0x1b4   :  { %266 = vmax.xlane.f32.xlu0 %v265_v27 }
 0x241   :  { %v267_v33 = vpop.xlane.xlu0 %266 }
 0x242   :  { %v272_v34 = vrot.slane %v267_v33, %v271_v29  ;;  %v276_v35 = vrot.slane %v267_v33, %v275_v30  ;;  %v280_v36 = vrot.slane %v267_v33, %v279_v31  ;;  %v284_v38 = vrot.slane %v267_v33, %v283_v32 }
 0x243   :  { %v288_v45 = vrot.slane %v267_v33, %v287_v37  ;;  %v292_v49 = vrot.slane %v267_v33, %v291_v44  ;;  %v296_v53 = vrot.slane %v267_v33, %v295_v48 }
 0x244   :  { %v309_v39 = vsub.f32 %v185_v60, %v272_v34  ;;  %v310_v40 = vsub.f32 %v188_v63, %v276_v35  ;;  %v311_v41 = vsub.f32 %v191_v59, %v280_v36  ;;  %v312_v46 = vsub.f32 %v194_v62, %v284_v38 }
 0x245   :  { %v313_v50 = vsub.f32 %v197_v15, %v288_v45  ;;  %v314_v54 = vsub.f32 %v200_v13, %v292_v49  ;;  %v300_v59 = vrot.slane %v267_v33, %v299_v52  ;;  %v315_v60 = vsub.f32 %v203_v21, %v296_v53 }
 0x246   :  { %v317_v42 = vmul.f32 1.442695, %v309_v39  ;;  %v319_v43 = vmul.f32 1.442695, %v310_v40  ;;  %v321_v47 = vmul.f32 1.442695, %v311_v41 }
 0x247   :  { %v323_v51 = vmul.f32 1.442695, %v312_v46  ;;  %v325_v55 = vmul.f32 1.442695, %v313_v50  ;;  %v327_v62 = vmul.f32 1.442695, %v314_v54  ;;  %v316_v0 = vsub.f32 %v856_v19, %v300_v59 }
 0x248   :  { %653 = vpow2.f32 %v317_v42  ;;  %v329_v1 = vmul.f32 1.442695, %v315_v60 }
 0x249   :  { %655 = vpow2.f32 %v319_v43  ;;  %v331_v9 = vmul.f32 1.442695, %v316_v0 }
 0x24a   :  { %657 = vpow2.f32 %v321_v47 }
 0x24b   :  { %659 = vpow2.f32 %v323_v51 }
 0x24c   :  { %661 = vpow2.f32 %v325_v55 }
 0x24d   :  { %663 = vpow2.f32 %v327_v62 }
 0x24e   :  { %665 = vpow2.f32 %v329_v1 }
 0x24f   :  { %667 = vpow2.f32 %v331_v9 }
 0x252   :  { %v654_v56 = vpop.eup %653 }
 0x253   :  { %v656_v57 = vpop.eup %655  ;;  %342 = vperm.xlu1 %633, %v654_v56  }
 0x254   :  { %345 = vperm.xlu0 %634, %v656_v57   ;;  %v658_v63 = vpop.eup %657 }
 0x255   :  { %v660_v5 = vpop.eup %659 }
 0x256   :  { %v662_v12 = vpop.eup %661 }
 0x257   :  { %348 = vperm.xlu1 %633, %v658_v63   ;;  %v664_v13 = vpop.eup %663 }
 0x258   :  { %v666_v14 = vpop.eup %665 }
 0x259   :  { %v668_v15 = vpop.eup %667 }
 0x25b   :  { %351 = vperm.xlu1 %633, %v660_v5  }
 0x25f   :  { %354 = vperm.xlu1 %633, %v662_v12  }
 0x263   :  { %357 = vperm.xlu1 %633, %v664_v13  }
 0x267   :  { %360 = vperm.xlu1 %633, %v666_v14  }
 0x26b   :  { %363 = vperm.xlu1 %633, %v668_v15  }
 0x2d2   :  { %v343_v16 = vpop.permute.xlu1 %342 }
 0x2d3   :  { %v346_v19 = vpop.permute.xlu0 %345  ;;  %v368_v23 = vrot.slane %v343_v16, %v845_v61 }
 0x2d4   :  { %v372_v22 = vrot.slane %v346_v19, %v845_v61 }
 0x2d6   :  { %v349_v17 = vpop.permute.xlu1 %348  ;;  %v397_v28 = vsel %vm249_vm1, %v372_v22, %v368_v23 }
 0x2d7   :  { %v376_v24 = vrot.slane %v349_v17, %v845_v61 }
 0x2d9   :  { %v398_v34 = vsel %vm251_vm2, %v376_v24, %v397_v28 }
 0x2da   :  { %v352_v18 = vpop.permute.xlu1 %351 }
 0x2db   :  { %v380_v25 = vrot.slane %v352_v18, %v845_v61 }
 0x2dd   :  { %v399_v36 = vsel %vm253_vm3, %v380_v25, %v398_v34 }
 0x2de   :  { %v355_v20 = vpop.permute.xlu1 %354 }
 0x2df   :  { %v384_v26 = vrot.slane %v355_v20, %v845_v61 }
 0x2e1   :  { %v400_v38 = vsel %vm255_vm4, %v384_v26, %v399_v36 }
 0x2e2   :  { %v358_v21 = vpop.permute.xlu1 %357 }
 0x2e3   :  { %v388_v33 = vrot.slane %v358_v21, %v845_v61 }
 0x2e5   :  { %v401_v40 = vsel %vm257_vm5, %v388_v33, %v400_v38 }
 0x2e6   :  { %v361_v27 = vpop.permute.xlu1 %360 }
 0x2e7   :  { %v392_v35 = vrot.slane %v361_v27, %v845_v61 }
 0x2e9   :  { %v402_v42 = vsel %vm259_vm6, %v392_v35, %v401_v40 }
 0x2ea   :  { %v364_v39 = vpop.permute.xlu1 %363 }
 0x2eb   :  { %v396_v41 = vrot.slane %v364_v39, %v845_v61 }
 0x2ed   :  { %v403_v43 = vsel %vm261_vm7, %v396_v41, %v402_v42 }
 0x2ee   :  { %v405_v45 = vsel %vm264_vm8, %v403_v43, 0.0 }
 0x2ef   :  { %406 = vadd.xlane.f32.xlu1 %v405_v45 }
 0x37c   :  { %v407_v46 = vpop.xlane.xlu1 %406 }
 0x37d   :  { %669 = vrcp.f32 %v407_v46 }
 0x387   :  { %v670_v47 = vpop.eup %669 }
 0x388   :  { %v413_v49 = vrot.slane %v670_v47, %v271_v29  ;;  %v417_v51 = vrot.slane %v670_v47, %v275_v30  ;;  %v421_v61 = vrot.slane %v670_v47, %v279_v31  ;;  %v425_v55 = vrot.slane %v670_v47, %v283_v32 }
 0x389   :  { %v429_v60 = vrot.slane %v670_v47, %v287_v37  ;;  %v433_v30 = vrot.slane %v670_v47, %v291_v44  ;;  %v437_v31 = vrot.slane %v670_v47, %v295_v48  ;;  %v441_v32 = vrot.slane %v670_v47, %v299_v52 }
 0x38a   :  { %v450_v50 = vmul.f32 %v654_v56, %v413_v49  ;;  %v451_v53 = vmul.f32 %v656_v57, %v417_v51  ;;  %v452_v54 = vmul.f32 %v658_v63, %v421_v61  ;;  %v453_v59 = vmul.f32 %v660_v5, %v425_v55 }
 0x38b   :  { %v454_v29 = vmul.f32 %v662_v12, %v429_v60  ;;  %v455_v56 = vmul.f32 %v664_v13, %v433_v30  ;;  %v456_v57 = vmul.f32 %v666_v14, %v437_v31  ;;  %v457_v62 = vmul.f32 %v668_v15, %v441_v32 }
 0x38c   :  { %460 = vperm.xlu0 %634, %v450_v50  }
 0x390   :  { %465 = vperm.xlu0 %634, %v451_v53  }
 0x394   :  { %470 = vperm.xlu0 %634, %v452_v54  }
 0x398   :  { %475 = vperm.xlu0 %634, %v453_v59  }
 0x39c   :  { %480 = vperm.xlu0 %634, %v454_v29  }
 0x3a0   :  { %485 = vperm.xlu0 %634, %v455_v56  }
 0x3a4   :  { %490 = vperm.xlu0 %634, %v456_v57  }
 0x3a8   :  { %495 = vperm.xlu0 %634, %v457_v62  }
 0x40b   :  { %v461_v63 = vpop.permute.xlu0 %460 }
 0x40c   :  { %v498_v44 = vmul.f32 %v461_v63, %v800_v2 }
 0x40e   :  { %v506_v58 = vsel %vm82_vm0, %v498_v44, 0.0 }
 0x40f   :  { %v466_v37 = vpop.permute.xlu0 %465  ;;  %v507_v16 = vrot.slane %v506_v58, 4 }
 0x410   :  { %v499_v0 = vmul.f32 %v466_v37, %v802_v3 }
 0x411   :  { %v508_v19 = vadd.f32 %v507_v16, %v506_v58 }
 0x412   :  { %v513_v9 = vsel %vm82_vm0, %v499_v0, 0.0 }
 0x413   :  { %v471_v1 = vpop.permute.xlu0 %470  ;;  %v514_v13 = vrot.slane %v513_v9, 4  ;;  %v509_v28 = vrot.slane %v508_v19, 2 }
 0x414   :  { %v500_v5 = vmul.f32 %v471_v1, %v804_v4 }
 0x415   :  { %v515_v18 = vadd.f32 %v514_v13, %v513_v9  ;;  %v510_v42 = vadd.f32 %v509_v28, %v508_v19 }
 0x416   :  { %v520_v48 = vsel %vm82_vm0, %v500_v5, 0.0 }
 0x417   :  { %v476_v12 = vpop.permute.xlu0 %475  ;;  %v521_v14 = vrot.slane %v520_v48, 4 }
 0x418   :  { %v501_v52 = vmul.f32 %v476_v12, %v808_v6  ;;  %v516_v6 = vrot.slane %v515_v18, 2 }
 0x419   :  { %v522_v4 = vadd.f32 %v521_v14, %v520_v48 }
 0x41a   :  { %v527_v15 = vsel %vm82_vm0, %v501_v52, 0.0  ;;  %v517_v38 = vadd.f32 %v516_v6, %v515_v18 }
 0x41b   :  { %v528_v3 = vrot.slane %v527_v15, 4  ;;  %v481_v17 = vpop.permute.xlu0 %480  ;;  %v523_v26 = vrot.slane %v522_v4, 2 }
 0x41c   :  { %v502_v2 = vmul.f32 %v481_v17, %v810_v7  ;;  %v518_v50 = vrot.slane %v517_v38, 1 }
 0x41d   :  { %v529_v21 = vadd.f32 %v528_v3, %v527_v15  ;;  %v524_v40 = vadd.f32 %v523_v26, %v522_v4 }
 0x41e   :  { %v534_v20 = vsel %vm82_vm0, %v502_v2, 0.0  ;;  %v519_v30 = vadd.f32 %v518_v50, %v517_v38 }
 0x41f   :  { %v535_v22 = vrot.slane %v534_v20, 4  ;;  %v486_v23 = vpop.permute.xlu0 %485  ;;  %v530_v33 = vrot.slane %v529_v21, 2  ;;  %v525_v61 = vrot.slane %v524_v40, 1 }
 0x420   :  { %v503_v24 = vmul.f32 %v486_v23, %v812_v8 }
 0x421   :  { %v536_v25 = vadd.f32 %v535_v22, %v534_v20  ;;  %v531_v43 = vadd.f32 %v530_v33, %v529_v21  ;;  %v526_v32 = vadd.f32 %v525_v61, %v524_v40 }
 0x422   :  { %v541_v27 = vsel %vm82_vm0, %v503_v24, 0.0 }
 0x423   :  { %v542_v34 = vrot.slane %v541_v27, 4  ;;  %v491_v35 = vpop.permute.xlu0 %490  ;;  %v537_v7 = vrot.slane %v536_v25, 2  ;;  %v532_v55 = vrot.slane %v531_v43, 1 }
 0x424   :  { %v504_v36 = vmul.f32 %v491_v35, %v816_v10  ;;  %v511_v10 = vrot.slane %v510_v42, 1 }
 0x425   :  { %v543_v39 = vadd.f32 %v542_v34, %v541_v27  ;;  %v538_v47 = vadd.f32 %v537_v7, %v536_v25  ;;  %v533_v63 = vadd.f32 %v532_v55, %v531_v43 }
 0x426   :  { %v548_v41 = vsel %vm82_vm0, %v504_v36, 0.0  ;;  %v512_v62 = vadd.f32 %v511_v10, %v510_v42 }
 0x427   :  { %v544_v8 = vrot.slane %v543_v39, 2  ;;  %v549_v45 = vrot.slane %v548_v41, 4  ;;  %v496_v46 = vpop.permute.xlu0 %495  ;;  %v539_v29 = vrot.slane %v538_v47, 1 }
 0x428   :  { %v505_v49 = vmul.f32 %v496_v46, %v818_v11  ;;  %v570_v1 = vsel %vm249_vm1, %v519_v30, %v512_v62 }
 0x429   :  { %v545_v51 = vadd.f32 %v544_v8, %v543_v39  ;;  %v550_v53 = vadd.f32 %v549_v45, %v548_v41  ;;  %v540_v0 = vadd.f32 %v539_v29, %v538_v47  ;;  %v571_v9 = vsel %vm251_vm2, %v526_v32, %v570_v1 }
 0x42a   :  { %v555_v54 = vsel %vm82_vm0, %v505_v49, 0.0  ;;  %v572_v12 = vsel %vm253_vm3, %v533_v63, %v571_v9 }
 0x42b   :  { %v551_v59 = vrot.slane %v550_v53, 2  ;;  %v556_v60 = vrot.slane %v555_v54, 4  ;;  %v546_v56 = vrot.slane %v545_v51, 1  ;;  %v573_v52 = vsel %vm255_vm4, %v540_v0, %v572_v12 }
 0x42d   :  { %v552_v31 = vadd.f32 %v551_v59, %v550_v53  ;;  %v557_v57 = vadd.f32 %v556_v60, %v555_v54  ;;  %v547_v44 = vadd.f32 %v546_v56, %v545_v51 }
 0x42f   :  { %v553_v37 = vrot.slane %v552_v31, 1  ;;  %v558_v11 = vrot.slane %v557_v57, 2  ;;  %v574_v14 = vsel %vm257_vm5, %v547_v44, %v573_v52 }
 0x431   :  { %v559_v5 = vadd.f32 %v558_v11, %v557_v57  ;;  %v554_v48 = vadd.f32 %v553_v37, %v552_v31 }
 0x433   :  { %v560_v58 = vrot.slane %v559_v5, 1  ;;  %v575_v15 = vsel %vm259_vm6, %v554_v48, %v574_v14 }
 0x435   :  { %v561_v13 = vadd.f32 %v560_v58, %v559_v5 }
 0x437   :  { %v576_v16 = vsel %vm261_vm7, %v561_v13, %v575_v15 }
 0x438   :  { %578 = vst.msk [vmem:[#allocation7] sm:$0xff] %vm82_vm0, %v576_v16 }
 0x439   :  { %726 = shalt.err (!%p723_p6)
}
 0x43a   :  { %s727_s22 = scalar_lea.hbm %s963_s4, 128 }
 0x43b   :  { %p728_p7 = scmp.ne.s32.totalorder %s963_s4, %s727_s22  ;;  %p731_p8 = scmp.lt.u32.totalorder %s727_s22, %s963_s4 }
 0x43d   :  { %p733_p9 = pnand %p731_p8, %p728_p7 }
 0x43f   :  { %736 = shalt.err (!%p733_p9)
}
 0x440   :  { %588 = dma.vmem_to_hbm [thread:$0]  %s586_s18, 128, %s963_s4, [#allocation4]  }
 0x441   :  { %741 = dma.done.wait [#allocation4], 128  }
 0x442   :  { %742 = vsyncadd [#allocation4], 4294967168 }
 0x443   :  { %592 = vsyncpa [#allocation3], 1 }
 0x444   :  { %593 = vsyncpa [#allocation6], 1 }
 0x445   :  { %594 = vsyncpa [#allocation4], 1 }

</bundles_post_ra>
